<compile_context>
chip_gen: v7x
topology: tpu7x:2x2x1
jax: 0.10.0
libtpu: 0.0.40
codegen_flags: <defaults>
</compile_context>

<pallas_src>
import functools

import jax
import jax.numpy as jnp
from jax.experimental import pallas as pl
from jax.experimental.pallas import tpu as pltpu


# ---------------------------------------------------------------------------
# Fused Pallas kernel (one grid step == G images packed on the lane axis)
# ---------------------------------------------------------------------------
def _fused_conv_layer_kernel(x_ref, w1_ref, b1_ref, w2_ref, b2_ref, sel_ref,
                             o_ref, act_scr, *, K, W, HW, SEG, G):
    """Fused conv -> relu -> conv -> relu -> maxpool for G lane-packed images.

    x_ref   : (1, Cin,  G*SEG)   flat images, each in a zero-gap-padded segment
    w1_ref  : (Cout, KK*Cin)     conv1 weights, (tap, cin) contraction order
    b1_ref  : (Cout, 1)
    w2_ref  : (Cout, KK*Cout)    conv2 weights, (tap, cout) contraction order
    b2_ref  : (Cout, 1)
    sel_ref : (LWm, OUTW)        0/1 pool-decimation matrix (lane-dense cols)
    o_ref   : (1, Cout, OUTW)    pooled outputs, image-major on the lane axis
    act_scr : (Cout, G*SEG)      persistent padded-activation scratch (VMEM)
    """
    LW = (G - 1) * SEG + HW           # span covering all images' valid data
    LWm = LW - (W + 1)                # span needed by the 2x2 pool windows
    shifts = [kh * W + kw for kh in range(K) for kw in range(K)]

    # --- conv1 + ReLU: single MXU matmul over (tap, cin)-stacked windows ----
    xv = x_ref[0]                                               # (Cin, G*SEG)
    stk1 = jnp.concatenate([xv[:, d:d + LW] for d in shifts], axis=0)
    h1 = jnp.maximum(
        jnp.dot(w1_ref[...], stk1, preferred_element_type=jnp.float32)
        + b1_ref[...], 0.0)                                     # (Cout, LW)

    # --- stash conv1 output in the persistent padded scratch ----------------
    act_scr[:, LW:] = jnp.zeros((act_scr.shape[0], G * SEG - LW), jnp.float32)
    act_scr[:, :LW] = h1

    # --- conv2 + ReLU: single MXU matmul over (tap, cout)-stacked windows ---
    stk2 = jnp.concatenate([act_scr[:, d:d + LW] for d in shifts], axis=0)
    h2 = jnp.maximum(
        jnp.dot(w2_ref[...], stk2, preferred_element_type=jnp.float32)
        + b2_ref[...], 0.0)                                     # (Cout, LW)

    # --- 2x2 / stride-2 max pool: neighborhood max of 4 shifted windows, ----
    # --- then gather the even-(row,col) anchors via a 0/1 selection matmul --
    m = jnp.maximum(jnp.maximum(h2[:, :LWm], h2[:, 1:1 + LWm]),
                    jnp.maximum(h2[:, W:W + LWm], h2[:, W + 1:W + 1 + LWm]))
    o_ref[0] = jnp.dot(m, sel_ref[...],
                       preferred_element_type=jnp.float32).astype(o_ref.dtype)


# ---------------------------------------------------------------------------
# Wrapper: layout prep (tiny XLA ops) + pallas_call
# ---------------------------------------------------------------------------
def conv_layer_forward(x_nchw, params):
    """Forward pass matching ConvLayer.forward (eval mode) for NCHW input."""
    N, Cin, H, W = x_nchw.shape
    Cout, _, K, _ = params["w1"].shape
    KK, HW = K * K, H * W
    OH2, OW2 = H - 2 * (K - 1), W - 2 * (K - 1)   # after two VALID convs
    PH, PW = OH2 // 2, OW2 // 2                   # after 2x2 max pool (floor)
    P = PH * PW
    SEG = HW + 128                                # per-image lane segment
    assert SEG - HW >= (K - 1) * (W + 1), "gap too small for shifted windows"

    # At most 2 fat grid steps: both v7x TCs get work; near-minimal per-step
    # overhead on single-TC v5e/v6e.  G images per step live on the lane axis.
    num_steps = 2 if N >= 2 else 1
    G = -(-N // num_steps)
    Np = num_steps * G
    LW = (G - 1) * SEG + HW
    LWm = LW - (W + 1)
    OUTW = -(-(G * P) // 128) * 128               # lane-dense output width

    # Pack images lane-wise with per-image zero gaps: (steps, Cin, G*SEG).
    x_flat = x_nchw.reshape(N, Cin, HW).astype(jnp.float32)
    if Np != N:
        x_flat = jnp.concatenate(
            [x_flat, jnp.zeros((Np - N, Cin, HW), jnp.float32)], axis=0)
    x_pack = (jnp.pad(x_flat, ((0, 0), (0, 0), (0, SEG - HW)))
              .reshape(num_steps, G, Cin, SEG)
              .transpose(0, 2, 1, 3)
              .reshape(num_steps, Cin, G * SEG))

    # (Cout, Cin, K, K) -> (Cout, KK*Cin): contraction ordered (tap, cin),
    # matching the sublane-stacked window matrices built in the kernel.
    w1m = jnp.transpose(params["w1"], (0, 2, 3, 1)).reshape(Cout, KK * Cin)
    w2m = jnp.transpose(params["w2"], (0, 2, 3, 1)).reshape(Cout, KK * Cout)
    b1 = params["b1"].reshape(Cout, 1)
    b2 = params["b2"].reshape(Cout, 1)

    # 0/1 decimation matrix: row i -> output column g*P + j iff
    # i == g*SEG + flat index of pool anchor j.  Padding columns stay zero.
    j = jnp.arange(P)
    anchor = 2 * (j // PW) * W + 2 * (j % PW)                       # (P,)
    cols_anchor = (jnp.arange(G)[:, None] * SEG + anchor[None, :]).reshape(-1)
    col_src = jnp.full((OUTW,), -1, jnp.int32).at[:G * P].set(
        cols_anchor.astype(jnp.int32))
    sel = (jnp.arange(LWm)[:, None] == col_src[None, :]).astype(jnp.float32)

    kernel = functools.partial(_fused_conv_layer_kernel,
                               K=K, W=W, HW=HW, SEG=SEG, G=G)
    out = pl.pallas_call(
        kernel,
        out_shape=jax.ShapeDtypeStruct((num_steps, Cout, OUTW), jnp.float32),
        grid=(num_steps,),
        in_specs=[
            pl.BlockSpec((1, Cin, G * SEG), lambda n: (n, 0, 0)),   # per-step
            pl.BlockSpec((Cout, KK * Cin), lambda n: (0, 0)),       # resident
            pl.BlockSpec((Cout, 1), lambda n: (0, 0)),              # resident
            pl.BlockSpec((Cout, KK * Cout), lambda n: (0, 0)),      # resident
            pl.BlockSpec((Cout, 1), lambda n: (0, 0)),              # resident
            pl.BlockSpec((LWm, OUTW), lambda n: (0, 0)),            # resident
        ],
        out_specs=pl.BlockSpec((1, Cout, OUTW), lambda n: (n, 0, 0)),
        scratch_shapes=[pltpu.VMEM((Cout, G * SEG), jnp.float32)],
        compiler_params=pltpu.CompilerParams(
            dimension_semantics=("parallel",)),
    )(x_pack, w1m, b1, w2m, b2, sel)

    # (steps, Cout, OUTW) -> (N, Cout, PH, PW)
    out = out[:, :, :G * P].reshape(num_steps, Cout, G, P)
    out = out.transpose(0, 2, 1, 3).reshape(Np, Cout, PH, PW)

    # TODO(synk): nn.Dropout2d is stochastic channel dropout at train time; it
    # is treated as identity here (eval-mode semantics) for deterministic output.
    return out[:N]


# ---------------------------------------------------------------------------
# Deterministic parameter init (shapes from ConvLayer.__init__)
# ---------------------------------------------------------------------------
def init_params(key, in_c, out_c, K):
    k1, k2, k3, k4 = jax.random.split(key, 4)
    fan1 = float(in_c * K * K)
    fan2 = float(out_c * K * K)
    w1 = jax.random.uniform(k1, (out_c, in_c, K, K), jnp.float32, -1.0, 1.0) / jnp.sqrt(fan1)
    b1 = jax.random.uniform(k2, (out_c,), jnp.float32, -1.0, 1.0) / jnp.sqrt(fan1)
    w2 = jax.random.uniform(k3, (out_c, out_c, K, K), jnp.float32, -1.0, 1.0) / jnp.sqrt(fan2)
    b2 = jax.random.uniform(k4, (out_c,), jnp.float32, -1.0, 1.0) / jnp.sqrt(fan2)
    return {"w1": w1, "b1": b1, "w2": w2, "b2": b2}


# ---------------------------------------------------------------------------
# Pure-JAX reference (for correctness check)
# ---------------------------------------------------------------------------
def _ref_forward(x, p):
    def conv(x, w, b):
        y = jax.lax.conv_general_dilated(
            x, w, (1, 1), "VALID",
            dimension_numbers=("NCHW", "OIHW", "NCHW"),
            precision=jax.lax.Precision.HIGHEST,
        )
        return jax.nn.relu(y + b[None, :, None, None])

    y = conv(conv(x, p["w1"], p["b1"]), p["w2"], p["b2"])
    N, C, H, W = y.shape
    y = y[:, :, : H // 2 * 2, : W // 2 * 2].reshape(N, C, H // 2, 2, W // 2, 2)
    return y.max(axis=(3, 5))


if __name__ == "__main__":
    key = jax.random.PRNGKey(0)
    kx, kp = jax.random.split(key)

    in_c, out_c, kernel_size = 4, 8, 3
    x = jax.random.normal(kx, (2, in_c, 16, 16), jnp.float32)  # NCHW
    params = init_params(kp, in_c, out_c, kernel_size)

    fwd = jax.jit(conv_layer_forward)
    out = jax.block_until_ready(fwd(x, params))

    assert out.shape == (2, out_c, 6, 6), out.shape
    ref = _ref_forward(x, params)
    assert jnp.allclose(out, ref, atol=1e-3, rtol=1e-3), float(jnp.abs(out - ref).max())

    print("KERNEL_OK")
</pallas_src>

<mosaic_0001>
module attributes {stable_mosaic.version = 11 : i64} {
  func.func @_fused_conv_layer_kernel(%arg0: i32, %arg1: memref<1x4x384xf32, #tpu.memory_space<vmem>>, %arg2: memref<8x36xf32, #tpu.memory_space<vmem>>, %arg3: memref<8x1xf32, #tpu.memory_space<vmem>>, %arg4: memref<8x72xf32, #tpu.memory_space<vmem>>, %arg5: memref<8x1xf32, #tpu.memory_space<vmem>>, %arg6: memref<239x128xf32, #tpu.memory_space<vmem>>, %arg7: memref<1x8x128xf32, #tpu.memory_space<vmem>>, %arg8: memref<8x384xf32, #tpu.memory_space<vmem>>) attributes {dimension_semantics = [#tpu.dimension_semantics<parallel>], iteration_bounds = array<i64: 2>, scalar_prefetch = 0 : i64, scratch_operands = 1 : i64, tpu.core_type = #tpu.core_type<tc>, window_params = [{transform_indices = @transform_0, window_bounds = array<i64: 1, 4, 384>}, {pipeline_mode = #tpu.pipeline_mode<synchronous>, transform_indices = @transform_1, window_bounds = array<i64: 8, 36>}, {pipeline_mode = #tpu.pipeline_mode<synchronous>, transform_indices = @transform_2, window_bounds = array<i64: 8, 1>}, {pipeline_mode = #tpu.pipeline_mode<synchronous>, transform_indices = @transform_3, window_bounds = array<i64: 8, 72>}, {pipeline_mode = #tpu.pipeline_mode<synchronous>, transform_indices = @transform_4, window_bounds = array<i64: 8, 1>}, {pipeline_mode = #tpu.pipeline_mode<synchronous>, transform_indices = @transform_5, window_bounds = array<i64: 239, 128>}, {transform_indices = @transform_6, window_bounds = array<i64: 1, 8, 128>}]} {
    %c0 = arith.constant 0 : index
    %c0_0 = arith.constant 0 : index
    %c0_1 = arith.constant 0 : index
    %0 = vector.load %arg1[%c0, %c0_0, %c0_1] : memref<1x4x384xf32, #tpu.memory_space<vmem>>, vector<1x4x384xf32>
    %1 = vector.shape_cast %0 : vector<1x4x384xf32> to vector<4x384xf32>
    %2 = vector.extract_strided_slice %1 {offsets = [0, 0], sizes = [4, 256], strides = [1, 1]} : vector<4x384xf32> to vector<4x256xf32>
    %3 = vector.extract_strided_slice %1 {offsets = [0, 1], sizes = [4, 256], strides = [1, 1]} : vector<4x384xf32> to vector<4x256xf32>
    %4 = vector.extract_strided_slice %1 {offsets = [0, 2], sizes = [4, 256], strides = [1, 1]} : vector<4x384xf32> to vector<4x256xf32>
    %5 = vector.extract_strided_slice %1 {offsets = [0, 16], sizes = [4, 256], strides = [1, 1]} : vector<4x384xf32> to vector<4x256xf32>
    %6 = vector.extract_strided_slice %1 {offsets = [0, 17], sizes = [4, 256], strides = [1, 1]} : vector<4x384xf32> to vector<4x256xf32>
    %7 = vector.extract_strided_slice %1 {offsets = [0, 18], sizes = [4, 256], strides = [1, 1]} : vector<4x384xf32> to vector<4x256xf32>
    %8 = vector.extract_strided_slice %1 {offsets = [0, 32], sizes = [4, 256], strides = [1, 1]} : vector<4x384xf32> to vector<4x256xf32>
    %9 = vector.extract_strided_slice %1 {offsets = [0, 33], sizes = [4, 256], strides = [1, 1]} : vector<4x384xf32> to vector<4x256xf32>
    %10 = vector.extract_strided_slice %1 {offsets = [0, 34], sizes = [4, 256], strides = [1, 1]} : vector<4x384xf32> to vector<4x256xf32>
    %11 = tpu.concatenate %2, %3, %4, %5, %6, %7, %8, %9, %10 in 0 : vector<4x256xf32>, vector<4x256xf32>, vector<4x256xf32>, vector<4x256xf32>, vector<4x256xf32>, vector<4x256xf32>, vector<4x256xf32>, vector<4x256xf32>, vector<4x256xf32> -> vector<36x256xf32>
    %c0_2 = arith.constant 0 : index
    %c0_3 = arith.constant 0 : index
    %12 = vector.load %arg2[%c0_2, %c0_3] : memref<8x36xf32, #tpu.memory_space<vmem>>, vector<8x36xf32>
    %cst = arith.constant dense<0.000000e+00> : vector<8x256xf32>
    %13 = tpu.matmul %12, %11, %cst {dimension_numbers = #tpu.dot_dimension_numbers<[1], [0], [0], [1], [0, 0, 1, 1], [], []>} : vector<8x36xf32>, vector<36x256xf32>, vector<8x256xf32> -> vector<8x256xf32>
    %c0_4 = arith.constant 0 : index
    %c0_5 = arith.constant 0 : index
    %14 = vector.load %arg3[%c0_4, %c0_5] : memref<8x1xf32, #tpu.memory_space<vmem>>, vector<8x1xf32>
    %15 = vector.broadcast %14 : vector<8x1xf32> to vector<8x256xf32>
    %16 = arith.addf %13, %15 : vector<8x256xf32>
    %cst_6 = arith.constant 0.000000e+00 : f32
    %17 = vector.broadcast %cst_6 : f32 to vector<8x256xf32>
    %18 = arith.maximumf %16, %17 : vector<8x256xf32>
    %cst_7 = arith.constant 0.000000e+00 : f32
    %19 = vector.broadcast %cst_7 : f32 to vector<8x128xf32>
    %c0_8 = arith.constant 0 : index
    %c256 = arith.constant 256 : index
    %20 = vector.load %arg8[%c0_8, %c256] : memref<8x384xf32, #tpu.memory_space<vmem>>, vector<8x128xf32>
    tpu.vector_store %arg8[%c0_8, %c256], %19 {strides = array<i32>} : memref<8x384xf32, #tpu.memory_space<vmem>>, vector<8x128xf32>,
    %c0_9 = arith.constant 0 : index
    %c0_10 = arith.constant 0 : index
    %21 = vector.load %arg8[%c0_9, %c0_10] : memref<8x384xf32, #tpu.memory_space<vmem>>, vector<8x256xf32>
    tpu.vector_store %arg8[%c0_9, %c0_10], %18 {strides = array<i32>} : memref<8x384xf32, #tpu.memory_space<vmem>>, vector<8x256xf32>,
    %c0_11 = arith.constant 0 : index
    %c0_12 = arith.constant 0 : index
    %22 = vector.load %arg8[%c0_11, %c0_12] : memref<8x384xf32, #tpu.memory_space<vmem>>, vector<8x256xf32>
    %c0_13 = arith.constant 0 : index
    %c1 = arith.constant 1 : index
    %23 = vector.load %arg8[%c0_13, %c1] : memref<8x384xf32, #tpu.memory_space<vmem>>, vector<8x256xf32>
    %c0_14 = arith.constant 0 : index
    %c2 = arith.constant 2 : index
    %24 = vector.load %arg8[%c0_14, %c2] : memref<8x384xf32, #tpu.memory_space<vmem>>, vector<8x256xf32>
    %c0_15 = arith.constant 0 : index
    %c16 = arith.constant 16 : index
    %25 = vector.load %arg8[%c0_15, %c16] : memref<8x384xf32, #tpu.memory_space<vmem>>, vector<8x256xf32>
    %c0_16 = arith.constant 0 : index
    %c17 = arith.constant 17 : index
    %26 = vector.load %arg8[%c0_16, %c17] : memref<8x384xf32, #tpu.memory_space<vmem>>, vector<8x256xf32>
    %c0_17 = arith.constant 0 : index
    %c18 = arith.constant 18 : index
    %27 = vector.load %arg8[%c0_17, %c18] : memref<8x384xf32, #tpu.memory_space<vmem>>, vector<8x256xf32>
    %c0_18 = arith.constant 0 : index
    %c32 = arith.constant 32 : index
    %28 = vector.load %arg8[%c0_18, %c32] : memref<8x384xf32, #tpu.memory_space<vmem>>, vector<8x256xf32>
    %c0_19 = arith.constant 0 : index
    %c33 = arith.constant 33 : index
    %29 = vector.load %arg8[%c0_19, %c33] : memref<8x384xf32, #tpu.memory_space<vmem>>, vector<8x256xf32>
    %c0_20 = arith.constant 0 : index
    %c34 = arith.constant 34 : index
    %30 = vector.load %arg8[%c0_20, %c34] : memref<8x384xf32, #tpu.memory_space<vmem>>, vector<8x256xf32>
    %31 = tpu.concatenate %22, %23, %24, %25, %26, %27, %28, %29, %30 in 0 : vector<8x256xf32>, vector<8x256xf32>, vector<8x256xf32>, vector<8x256xf32>, vector<8x256xf32>, vector<8x256xf32>, vector<8x256xf32>, vector<8x256xf32>, vector<8x256xf32> -> vector<72x256xf32>
    %c0_21 = arith.constant 0 : index
    %c0_22 = arith.constant 0 : index
    %32 = vector.load %arg4[%c0_21, %c0_22] : memref<8x72xf32, #tpu.memory_space<vmem>>, vector<8x72xf32>
    %cst_23 = arith.constant dense<0.000000e+00> : vector<8x256xf32>
    %33 = tpu.matmul %32, %31, %cst_23 {dimension_numbers = #tpu.dot_dimension_numbers<[1], [0], [0], [1], [0, 0, 1, 1], [], []>} : vector<8x72xf32>, vector<72x256xf32>, vector<8x256xf32> -> vector<8x256xf32>
    %c0_24 = arith.constant 0 : index
    %c0_25 = arith.constant 0 : index
    %34 = vector.load %arg5[%c0_24, %c0_25] : memref<8x1xf32, #tpu.memory_space<vmem>>, vector<8x1xf32>
    %35 = vector.broadcast %34 : vector<8x1xf32> to vector<8x256xf32>
    %36 = arith.addf %33, %35 : vector<8x256xf32>
    %cst_26 = arith.constant 0.000000e+00 : f32
    %37 = vector.broadcast %cst_26 : f32 to vector<8x256xf32>
    %38 = arith.maximumf %36, %37 : vector<8x256xf32>
    %39 = vector.extract_strided_slice %38 {offsets = [0, 0], sizes = [8, 239], strides = [1, 1]} : vector<8x256xf32> to vector<8x239xf32>
    %40 = vector.extract_strided_slice %38 {offsets = [0, 1], sizes = [8, 239], strides = [1, 1]} : vector<8x256xf32> to vector<8x239xf32>
    %41 = arith.maximumf %39, %40 : vector<8x239xf32>
    %42 = vector.extract_strided_slice %38 {offsets = [0, 16], sizes = [8, 239], strides = [1, 1]} : vector<8x256xf32> to vector<8x239xf32>
    %43 = vector.extract_strided_slice %38 {offsets = [0, 17], sizes = [8, 239], strides = [1, 1]} : vector<8x256xf32> to vector<8x239xf32>
    %44 = arith.maximumf %42, %43 : vector<8x239xf32>
    %45 = arith.maximumf %41, %44 : vector<8x239xf32>
    %c0_27 = arith.constant 0 : index
    %c0_28 = arith.constant 0 : index
    %46 = vector.load %arg6[%c0_27, %c0_28] : memref<239x128xf32, #tpu.memory_space<vmem>>, vector<239x128xf32>
    %cst_29 = arith.constant dense<0.000000e+00> : vector<8x128xf32>
    %47 = tpu.matmul %45, %46, %cst_29 {dimension_numbers = #tpu.dot_dimension_numbers<[1], [0], [0], [1], [0, 0, 1, 1], [], []>} : vector<8x239xf32>, vector<239x128xf32>, vector<8x128xf32> -> vector<8x128xf32>
    %c0_30 = arith.constant 0 : index
    %c0_31 = arith.constant 0 : index
    %c0_32 = arith.constant 0 : index
    %48 = vector.load %arg7[%c0_30, %c0_31, %c0_32] : memref<1x8x128xf32, #tpu.memory_space<vmem>>, vector<1x8x128xf32>
    %49 = vector.shape_cast %48 : vector<1x8x128xf32> to vector<8x128xf32>
    %50 = vector.shape_cast %47 : vector<8x128xf32> to vector<1x8x128xf32>
    tpu.vector_store %arg7[%c0_30, %c0_31, %c0_32], %50 {strides = array<i32>} : memref<1x8x128xf32, #tpu.memory_space<vmem>>, vector<1x8x128xf32>,
    return
  }
  func.func @transform_0(%arg0: i32) -> (i32, i32, i32) {
    %c0_i32 = arith.constant 0 : i32
    %c0_i32_0 = arith.constant 0 : i32
    %c0_i32_1 = arith.constant 0 : i32
    return %arg0, %c0_i32, %c0_i32_0 : i32, i32, i32
  }
  func.func @transform_1(%arg0: i32) -> (i32, i32) {
    %c0_i32 = arith.constant 0 : i32
    %c0_i32_0 = arith.constant 0 : i32
    %c0_i32_1 = arith.constant 0 : i32
    return %c0_i32, %c0_i32_0 : i32, i32
  }
  func.func @transform_2(%arg0: i32) -> (i32, i32) {
    %c0_i32 = arith.constant 0 : i32
    %c0_i32_0 = arith.constant 0 : i32
    %c0_i32_1 = arith.constant 0 : i32
    return %c0_i32, %c0_i32_0 : i32, i32
  }
  func.func @transform_3(%arg0: i32) -> (i32, i32) {
    %c0_i32 = arith.constant 0 : i32
    %c0_i32_0 = arith.constant 0 : i32
    %c0_i32_1 = arith.constant 0 : i32
    return %c0_i32, %c0_i32_0 : i32, i32
  }
  func.func @transform_4(%arg0: i32) -> (i32, i32) {
    %c0_i32 = arith.constant 0 : i32
    %c0_i32_0 = arith.constant 0 : i32
    %c0_i32_1 = arith.constant 0 : i32
    return %c0_i32, %c0_i32_0 : i32, i32
  }
  func.func @transform_5(%arg0: i32) -> (i32, i32) {
    %c0_i32 = arith.constant 0 : i32
    %c0_i32_0 = arith.constant 0 : i32
    %c0_i32_1 = arith.constant 0 : i32
    return %c0_i32, %c0_i32_0 : i32, i32
  }
  func.func @transform_6(%arg0: i32) -> (i32, i32, i32) {
    %c0_i32 = arith.constant 0 : i32
    %c0_i32_0 = arith.constant 0 : i32
    %c0_i32_1 = arith.constant 0 : i32
    return %arg0, %c0_i32, %c0_i32_0 : i32, i32, i32
  }
}

</mosaic_0001>

<bundles_post_ra>
// kernel: conv_layer_forward.1
= control target key start
LH: loop header
LB: loop body
LE: loop exit
PB: predicated region body
PF: predicated region fallthrough
CT: control target
= control target key end

     0   :  { %s1035_s21 = smov 0   ;;  %s1286_s0 = inlined_call_operand.vmem [shape: f32[2,4,384], index: 0, kind: input, shape index: {}]   ;;  %s1287_s1 = inlined_call_operand.vmem [shape: f32[8,36], index: 1, kind: input, shape index: {}]   ;;  %s1288_s2 = inlined_call_operand.vmem [shape: f32[8,1], index: 2, kind: input, shape index: {}]   ;;  %s1289_s3 = inlined_call_operand.vmem [shape: f32[8,72], index: 3, kind: input, shape index: {}]   ;;  %s1290_s4 = inlined_call_operand.vmem [shape: f32[8,1], index: 4, kind: input, shape index: {}]   ;;  %s1291_s5 = inlined_call_operand.vmem [shape: f32[239,128], index: 5, kind: input, shape index: {}]   ;;  %s1292_s6 = inlined_call_operand.vmem [shape: f32[2,8,128], index: 6, kind: output, shape index: {}]  }
   0x1 LB: > { %s799_s22 = sadd.s32 4294967295, %s986_s21   ;;  %p803_p0 = scmp.ge.s32.totalorder %s986_s21, 1  ;;  %s986_s21 = sphi %s1035_s21, %s16_s21  }
   0x2   : > { %p212_p1 = scmp.lt.s32.totalorder %s986_s21, 3 }
   0x4   : > { %p213_p2 = pnand %p803_p0, %p212_p1 }
   0x5   : > { %p241_p3 = scmp.lt.s32.totalorder (!%p213_p2), %s799_s22, 1  ;;  %s988_s27 = smov (!%p213_p2), 126   ;;  %v995_v7 = vmov (!%p213_p2), 0.0   ;;  %v996_v8 = vmov (!%p213_p2), 0   ;;  %v354_v9 = vld [vmem:[%s1288_s2] sm:$0xff] (!%p213_p2)  ;;  %vm264_vm0 = vcmask (!%p213_p2), 1039360  }
   0x6   : > { %216 = sbr.rel (%p213_p2) target bundleno = 1202 (0x4b2), region = 44  ;;  %s989_s28 = smov (!%p213_p2), 112   ;;  %432 = vmatprep.mubr.f32.mxu1 (!%p213_p2), %v995_v7  ;;  %940 = vset.pattern.permute.xlu1 (!%p213_p2), %v996_v8  ;;  %vm344_vm1 = vcmask (!%p213_p2), 1043456   ;;  %vm286_vm2 = vcmask (!%p213_p2), 916480   ;;  %vm275_vm3 = vcmask (!%p213_p2), 1031168   ;;  %vm297_vm4 = vcmask (!%p213_p2), 908288  }
   0x7   : > { %s990_s29 = smov (!%p213_p2), 127   ;;  %s991_s30 = smov (!%p213_p2), 111   ;;  %976 = vset.pattern.permute.xlu0 (!%p213_p2), %v996_v8  ;;  %vm308_vm5 = vcmask (!%p213_p2), 900096   ;;  %vm319_vm6 = vcmask (!%p213_p2), 785408   ;;  %vm330_vm7 = vcmask (!%p213_p2), 777216   ;;  %vm341_vm8 = vcmask (!%p213_p2), 769024  }
   0x8   : > { %s992_s7 = smov (!%p213_p2), 110   ;;  %s993_s8 = smov (!%p213_p2), 96   ;;  %vm360_vm9 = vcmask (!%p213_p2), 293888   ;;  %vm539_vm10 = vcmask (!%p213_p2), 588800   ;;  %vm671_vm11 = vcmask (!%p213_p2), 1046528   ;;  %vm999_vm12 = vmmov (!%p213_p2), 1  }
   0x9   : > { %s994_s9 = smov (!%p213_p2), 95   ;;  %s997_s10 = smov (!%p213_p2), 94   ;;  %vm882_vm13 = vmpackc.low (!%p213_p2), %vm671_vm11, %vm999_vm12 }
   0xd   : > { %s1294_s22 = smov (!%p241_p3, %s799_s22), 1 }
   0xe   : > { %s884_s23 = smul.u32 12, %s1294_s22  ;;  %s805_s17 = sshll.u32 %s1294_s22, 3 }
   0xf   : > { %s249_s20 = scalar_lea.vmem %s1292_s6, %s805_s17 }
  0x10   : > { %s245_s26 = scalar_lea.vmem %s1286_s0, %s884_s23 }
  0x11   : > { %v1049_v0 = vld [vmem:[%s245_s26] sm:$0xff]  ;;  %v251_v1 = vld [vmem:[%s245_s26 + $0x8] sm:$0xf] }
  0x12   : > { %269 = vrot.lane.b32.xlu0 %v1049_v0, %s988_s27  ;;  %v257_v2 = vcombine.low %v251_v1, %v251_v1  ;;  %v253_v3 = vcombine.high %v1049_v0, %v1049_v0  ;;  %v256_v5 = vcombine.low %v1049_v0, %v1049_v0 }
  0x14   : > { %v915_v4 = vpack.i.bf16 %v257_v2, %v1049_v0  ;;  %v910_v6 = vpack.i.bf16 %v251_v1, %v253_v3 }
  0x16   : > { %916 = vrot.lane.b32.xlu1 %v915_v4, %s989_s28  ;;  %906 = vrot.lane.b32.xlu0 %v915_v4, %s990_s29 }
  0x1a   : > { %258 = vrot.lane.b32.xlu1 %v256_v5, %s990_s29  ;;  %911 = vrot.lane.b32.xlu0 %v910_v6, %s988_s27 }
  0x1e   : > { %280 = vrot.lane.b32.xlu1 %v256_v5, %s989_s28  ;;  %921 = vrot.lane.b32.xlu0 %v910_v6, %s991_s30 }
  0x22   : > { %926 = vrot.lane.b32.xlu1 %v915_v4, %s992_s7  ;;  %931 = vrot.lane.b32.xlu0 %v910_v6, %s993_s8 }
  0x26   : > { %936 = vrot.lane.b32.xlu1 %v915_v4, %s994_s9  ;;  %291 = vrot.lane.b32.xlu0 %v1049_v0, %s991_s30  ;;  %v353_v4 = vld [vmem:[%s1287_s1] sm:$0xff] }
  0x2a   : > { %302 = vrot.lane.b32.xlu1 %v256_v5, %s992_s7  ;;  %313 = vrot.lane.b32.xlu0 %v1049_v0, %s993_s8 }
  0x2e   : > { %324 = vrot.lane.b32.xlu1 %v256_v5, %s994_s9  ;;  %337 = vrot.lane.b32.xlu0 %v253_v3, %s997_s10 }
  0x32   : > { %339 = vrot.lane.b32.xlu1 %v251_v1, %s997_s10  ;;  %335 = vrot.lane.b32.xlu0 %v1049_v0, %s997_s10 }
  0x36   : > { %357 = vperm.xlu1 %940, %v354_v9  }
  0x84   : > { %v270_v10 = vpop.permute.xlu0 %269 }
  0x88   : > { %v917_v11 = vpop.permute.xlu1 %916  ;;  %v907_v12 = vpop.permute.xlu0 %906 }
  0x89   : > { %v909_v13 = vunpack.i.h.bf16 %v907_v12  ;;  %v908_v14 = vunpack.i.l.bf16 %v907_v12  ;;  %v919_v15 = vunpack.i.h.bf16 %v917_v11  ;;  %v918_v16 = vunpack.i.l.bf16 %v917_v11 }
  0x8b   : > { %v266_v17 = vsel %vm264_vm0, %v908_v14, %v909_v13  ;;  %v288_v25 = vsel %vm286_vm2, %v918_v16, %v919_v15  ;;  %v533_v15 = vld [vmem:[%s1290_s4] sm:$0xff] }
  0x8c   : > { %v259_v18 = vpop.permute.xlu1 %258  ;;  %v912_v19 = vpop.permute.xlu0 %911  ;;  %v346_v22 = vsel %vm344_vm1, %v253_v3, %v266_v17 }
  0x8d   : > { %v914_v20 = vunpack.i.h.bf16 %v912_v19  ;;  %v913_v21 = vunpack.i.l.bf16 %v912_v19  ;;  %v265_v23 = vsel %vm264_vm0, %v259_v18, %v908_v14 }
  0x8e   : > { %v345_v32 = vsel %vm344_vm1, %v1049_v0, %v265_v23 }
  0x8f   : > { %v277_v24 = vsel %vm275_vm3, %v913_v21, %v914_v20  ;;  %v276_v31 = vsel %vm275_vm3, %v270_v10, %v913_v21 }
  0x90   : > { %v281_v26 = vpop.permute.xlu1 %280  ;;  %v922_v27 = vpop.permute.xlu0 %921  ;;  %v348_v28 = vsel %vm344_vm1, %v277_v24, %v288_v25 }
  0x91   : > { %v287_v29 = vsel %vm286_vm2, %v281_v26, %v918_v16  ;;  %v814_v30 = vpack.c.bf16 %v348_v28, %v346_v22  ;;  %v924_v35 = vunpack.i.h.bf16 %v922_v27  ;;  %v923_v36 = vunpack.i.l.bf16 %v922_v27 }
  0x92   : > { %v347_v33 = vsel %vm344_vm1, %v276_v31, %v287_v29 }
  0x93   : > { %815 = vmatprep.subr.bf16.mxu1 %v814_v30  ;;  %v816_v34 = vpack.c.bf16 %v347_v33, %v345_v32  ;;  %v299_v43 = vsel %vm297_vm4, %v923_v36, %v924_v35 }
  0x94   : > { %v927_v37 = vpop.permute.xlu1 %926  ;;  %v932_v38 = vpop.permute.xlu0 %931 }
  0x95   : > { %v929_v39 = vunpack.i.h.bf16 %v927_v37  ;;  %v928_v40 = vunpack.i.l.bf16 %v927_v37  ;;  %v934_v41 = vunpack.i.h.bf16 %v932_v38  ;;  %v933_v42 = vunpack.i.l.bf16 %v932_v38  ;;  %817 = vmatpush1.bf16.msra.mxu1 %v816_v34 }
  0x97   : > { %v310_v48 = vsel %vm308_vm5, %v928_v40, %v929_v39  ;;  %v321_v49 = vsel %vm319_vm6, %v933_v42, %v934_v41 }
  0x98   : > { %v937_v44 = vpop.permute.xlu1 %936  ;;  %v292_v45 = vpop.permute.xlu0 %291  ;;  %v350_v53 = vsel %vm344_vm1, %v299_v43, %v310_v48 }
  0x99   : > { %v939_v46 = vunpack.i.h.bf16 %v937_v44  ;;  %v938_v47 = vunpack.i.l.bf16 %v937_v44  ;;  %v298_v59 = vsel %vm297_vm4, %v292_v45, %v923_v36 }
  0x9b   : > { %v332_v50 = vsel %vm330_vm7, %v938_v47, %v939_v46 }
  0x9c   : > { %v303_v51 = vpop.permute.xlu1 %302  ;;  %v314_v52 = vpop.permute.xlu0 %313  ;;  %v352_v54 = vsel %vm344_vm1, %v321_v49, %v332_v50 }
  0x9d   : > { %v818_v55 = vpack.c.bf16 %v352_v54, %v350_v53  ;;  %v309_v56 = vsel %vm308_vm5, %v303_v51, %v928_v40  ;;  %v320_v60 = vsel %vm319_vm6, %v314_v52, %v933_v42 }
  0x9e   : > { %v349_v62 = vsel %vm344_vm1, %v298_v59, %v309_v56 }
  0x9f   : > { %819 = vmatprep.subr.bf16.mxu1 %v818_v55 }
  0xa0   : > { %v325_v57 = vpop.permute.xlu1 %324  ;;  %v338_v58 = vpop.permute.xlu0 %337 }
  0xa1   : > { %v331_v61 = vsel %vm330_vm7, %v325_v57, %v938_v47 }
  0xa2   : > { %v351_v63 = vsel %vm344_vm1, %v320_v60, %v331_v61 }
  0xa3   : > { %v820_v0 = vpack.c.bf16 %v351_v63, %v349_v62 }
  0xa4   : > { %v340_v1 = vpop.permute.xlu1 %339  ;;  %v336_v3 = vpop.permute.xlu0 %335 }
  0xa5   : > { %v343_v2 = vsel %vm341_vm8, %v338_v58, %v340_v1  ;;  %821 = vmatpush1.bf16.msra.mxu1 %v820_v0  ;;  %v342_v5 = vsel %vm341_vm8, %v336_v3, %v338_v58 }
  0xa6   : > { %806 = vmatprep.subr.msk.mxu1 %vm344_vm1, %v343_v2 }
  0xa9   : > { %807 = vmatpush1.msk.msra.mxu1 %vm344_vm1, %v342_v5 }
  0xaa   : > { %808 = vmatmul.mubr.msk.f32.vlgmr.msra.gmra.mrb[0].mxu1 %vm360_vm9, %v353_v4 }
  0xab   : > { %607 = vmatprep.mubr.f32.mxu1 %v995_v7 }
  0xb5   : > { %v358_v6 = vpop.permute.xlu1 %357 }
 0x17d   : > { %v434_v8 = vpop.f32.mrb[0].mxu1 }
 0x17e   : > { %v435_v9 = vadd.f32 %v434_v8, %v358_v6  ;;  %v436_v10 = vpop.f32.mrb[1].mxu1  ;;  %v638_v8 = vld [vmem:[%s1291_s5] sm:$0xff] }
 0x17f   : > { %v437_v12 = vadd.f32 %v436_v10, %v358_v6  ;;  %v532_v6 = vld [vmem:[%s1289_s3] sm:$0xff]  ;;  %v640_v10 = vld [vmem:[%s1291_s5 + $0x10] sm:$0xff] }
 0x180   : > { %v439_v11 = vmax.f32 %v435_v9, 0.0  ;;  %v639_v9 = vld [vmem:[%s1291_s5 + $0x8] sm:$0xff] }
 0x181   : > { %v440_v13 = vmax.f32 %v437_v12, 0.0  ;;  %v839_v12 = vpack.c.bf16 %v639_v9, %v638_v8 }
 0x182   : > { %462 = vrot.lane.b32.xlu0 %v439_v11, %s988_s27  ;;  %452 = vrot.lane.b32.xlu1 %v439_v11, %s990_s29 }
 0x183   : > { %v941_v14 = vpack.i.bf16 %v995_v7, %v440_v13 }
 0x186   : > { %482 = vrot.lane.b32.xlu0 %v439_v11, %s991_s30  ;;  %472 = vrot.lane.b32.xlu1 %v439_v11, %s989_s28 }
 0x18a   : > { %502 = vrot.lane.b32.xlu0 %v439_v11, %s993_s8  ;;  %492 = vrot.lane.b32.xlu1 %v439_v11, %s992_s7 }
 0x18e   : > { %942 = vrot.lane.b32.xlu0 %v941_v14, %s990_s29  ;;  %952 = vrot.lane.b32.xlu1 %v941_v14, %s989_s28 }
 0x192   : > { %947 = vrot.lane.b32.xlu0 %v941_v14, %s988_s27  ;;  %962 = vrot.lane.b32.xlu1 %v941_v14, %s992_s7 }
 0x196   : > { %957 = vrot.lane.b32.xlu0 %v941_v14, %s991_s30  ;;  %972 = vrot.lane.b32.xlu1 %v941_v14, %s994_s9 }
 0x19a   : > { %967 = vrot.lane.b32.xlu0 %v941_v14, %s993_s8  ;;  %512 = vrot.lane.b32.xlu1 %v439_v11, %s994_s9 }
 0x19e   : > { %524 = vrot.lane.b32.xlu0 %v440_v13, %s997_s10  ;;  %526 = vrot.lane.b32.xlu1 %v995_v7, %s997_s10 }
 0x1a2   : > { %522 = vrot.lane.b32.xlu0 %v439_v11, %s997_s10  ;;  %536 = vperm.xlu1 %940, %v533_v15  }
 0x1f4   : > { %v463_v16 = vpop.permute.xlu0 %462  ;;  %v453_v17 = vpop.permute.xlu1 %452 }
 0x1f8   : > { %v483_v18 = vpop.permute.xlu0 %482  ;;  %v473_v19 = vpop.permute.xlu1 %472 }
 0x1fc   : > { %v503_v20 = vpop.permute.xlu0 %502  ;;  %v493_v21 = vpop.permute.xlu1 %492 }
 0x200   : > { %v943_v22 = vpop.permute.xlu0 %942  ;;  %v953_v23 = vpop.permute.xlu1 %952 }
 0x201   : > { %v945_v24 = vunpack.i.h.bf16 %v943_v22  ;;  %v944_v25 = vunpack.i.l.bf16 %v943_v22  ;;  %v955_v7 = vunpack.i.h.bf16 %v953_v23  ;;  %v954_v27 = vunpack.i.l.bf16 %v953_v23 }
 0x203   : > { %v458_v26 = vsel %vm264_vm0, %v453_v17, %v944_v25  ;;  %v459_v28 = vsel %vm264_vm0, %v944_v25, %v945_v24  ;;  %v478_v37 = vsel %vm286_vm2, %v473_v19, %v954_v27  ;;  %v479_v40 = vsel %vm286_vm2, %v954_v27, %v955_v7  ;;  %v642_v17 = vld [vmem:[%s1291_s5 + $0x20] sm:$0xff]  ;;  %v644_v25 = vld [vmem:[%s1291_s5 + $0x30] sm:$0xff] }
 0x204   : > { %v824_v29 = vpack.c.bf16 %v458_v26, %v439_v11  ;;  %v948_v30 = vpop.permute.xlu0 %947  ;;  %v963_v31 = vpop.permute.xlu1 %962  ;;  %v822_v32 = vpack.c.bf16 %v459_v28, %v440_v13  ;;  %v998_v11 = vmov 0.0|0.0   ;;  %v641_v13 = vld [vmem:[%s1291_s5 + $0x18] sm:$0xff]  ;;  %v646_v27 = vld [vmem:[%s1291_s5 + $0x40] sm:$0xff]  ;;  %v647_v28 = vld [vmem:[%s1291_s5 + $0x48] sm:$0xff] }
 0x205   : > { %v950_v33 = vunpack.i.h.bf16 %v948_v30  ;;  %v949_v34 = vunpack.i.l.bf16 %v948_v30  ;;  %v965_v35 = vunpack.i.h.bf16 %v963_v31  ;;  %v964_v36 = vunpack.i.l.bf16 %v963_v31  ;;  %838 = vmatprep.subr.bf16.mxu0 %v998_v11  ;;  %v645_v26 = vld [vmem:[%s1291_s5 + $0x38] sm:$0xff]  ;;  %v648_v30 = vld [vmem:[%s1291_s5 + $0x50] sm:$0xff] }
 0x206   : > { %823 = vmatprep.subr.bf16.mxu1 %v822_v32  ;;  %840 = vmatpush1.bf16.msra.mxu0 %v839_v12  ;;  %v842_v14 = vpack.c.bf16 %v641_v13, %v640_v10  ;;  %v848_v7 = vpack.c.bf16 %v645_v26, %v644_v25  ;;  %v649_v31 = vld [vmem:[%s1291_s5 + $0x58] sm:$0xff] }
 0x207   : > { %v468_v38 = vsel %vm275_vm3, %v463_v16, %v949_v34  ;;  %825 = vmatpush1.bf16.msra.mxu1 %v824_v29  ;;  %v469_v39 = vsel %vm275_vm3, %v949_v34, %v950_v33  ;;  %v498_v47 = vsel %vm308_vm5, %v493_v21, %v964_v36  ;;  %v499_v48 = vsel %vm308_vm5, %v964_v36, %v965_v35  ;;  %v650_v33 = vld [vmem:[%s1291_s5 + $0x60] sm:$0xff]  ;;  %v651_v34 = vld [vmem:[%s1291_s5 + $0x68] sm:$0xff]  ;;  %v652_v36 = vld [vmem:[%s1291_s5 + $0x70] sm:$0xff] }
 0x208   : > { %v828_v41 = vpack.c.bf16 %v478_v37, %v468_v38  ;;  %v958_v42 = vpop.permute.xlu0 %957  ;;  %v973_v43 = vpop.permute.xlu1 %972  ;;  %v826_v44 = vpack.c.bf16 %v479_v40, %v469_v39  ;;  %841 = vmatprep.subr.bf16.mxu0 %v998_v11  ;;  %v851_v29 = vpack.c.bf16 %v647_v28, %v646_v27  ;;  %v854_v32 = vpack.c.bf16 %v649_v31, %v648_v30  ;;  %v653_v37 = vld [vmem:[%s1291_s5 + $0x78] sm:$0xff]  ;;  %v654_v39 = vld [vmem:[%s1291_s5 + $0x80] sm:$0xff]  ;;  %v655_v40 = vld [vmem:[%s1291_s5 + $0x88] sm:$0xff] }
 0x209   : > { %v960_v45 = vunpack.i.h.bf16 %v958_v42  ;;  %v959_v46 = vunpack.i.l.bf16 %v958_v42  ;;  %v975_v50 = vunpack.i.h.bf16 %v973_v43  ;;  %v974_v51 = vunpack.i.l.bf16 %v973_v43  ;;  %v656_v42 = vld [vmem:[%s1291_s5 + $0x90] sm:$0xff]  ;;  %v657_v43 = vld [vmem:[%s1291_s5 + $0x98] sm:$0xff] }
 0x20a   : > { %827 = vmatprep.subr.bf16.mxu1 %v826_v44  ;;  %843 = vmatpush1.bf16.msra.mxu0 %v842_v14  ;;  %v857_v35 = vpack.c.bf16 %v651_v34, %v650_v33  ;;  %v860_v38 = vpack.c.bf16 %v653_v37, %v652_v36  ;;  %v866_v44 = vpack.c.bf16 %v657_v43, %v656_v42 }
 0x20b   : > { %v488_v49 = vsel %vm297_vm4, %v483_v18, %v959_v46  ;;  %829 = vmatpush1.bf16.msra.mxu1 %v828_v41  ;;  %v489_v52 = vsel %vm297_vm4, %v959_v46, %v960_v45  ;;  %v519_v62 = vsel %vm330_vm7, %v974_v51, %v975_v50  ;;  %v643_v18 = vld [vmem:[%s1291_s5 + $0x28] sm:$0xff]  ;;  %844 = vmatprep.subr.bf16.mxu0 %v998_v11  ;;  %v658_v45 = vld [vmem:[%s1291_s5 + $0xa0] sm:$0xff] }
 0x20c   : > { %v832_v53 = vpack.c.bf16 %v498_v47, %v488_v49  ;;  %v968_v54 = vpop.permute.xlu0 %967  ;;  %v513_v55 = vpop.permute.xlu1 %512  ;;  %v830_v56 = vpack.c.bf16 %v499_v48, %v489_v52  ;;  %v845_v23 = vpack.c.bf16 %v643_v18, %v642_v17  ;;  %v863_v41 = vpack.c.bf16 %v655_v40, %v654_v39  ;;  %v659_v46 = vld [vmem:[%s1291_s5 + $0xa8] sm:$0xff]  ;;  %v660_v48 = vld [vmem:[%s1291_s5 + $0xb0] sm:$0xff]  ;;  %v661_v49 = vld [vmem:[%s1291_s5 + $0xb8] sm:$0xff] }
 0x20d   : > { %v970_v57 = vunpack.i.h.bf16 %v968_v54  ;;  %v969_v58 = vunpack.i.l.bf16 %v968_v54  ;;  %v518_v60 = vsel %vm330_vm7, %v513_v55, %v974_v51  ;;  %v869_v47 = vpack.c.bf16 %v659_v46, %v658_v45  ;;  %v662_v51 = vld [vmem:[%s1291_s5 + $0xc0] sm:$0xff]  ;;  %v663_v52 = vld [vmem:[%s1291_s5 + $0xc8] sm:$0xff]  ;;  %v664_v54 = vld [vmem:[%s1291_s5 + $0xd0] sm:$0xff] }
 0x20e   : > { %831 = vmatprep.subr.bf16.mxu1 %v830_v56  ;;  %846 = vmatpush1.bf16.msra.mxu0 %v845_v23  ;;  %v872_v50 = vpack.c.bf16 %v661_v49, %v660_v48  ;;  %v665_v55 = vld [vmem:[%s1291_s5 + $0xd8] sm:$0xff] }
 0x20f   : > { %v508_v59 = vsel %vm319_vm6, %v503_v20, %v969_v58  ;;  %833 = vmatpush1.bf16.msra.mxu1 %v832_v53  ;;  %v509_v61 = vsel %vm319_vm6, %v969_v58, %v970_v57  ;;  %847 = vmatprep.subr.bf16.mxu0 %v998_v11  ;;  %v875_v53 = vpack.c.bf16 %v663_v52, %v662_v51  ;;  %v666_v57 = vld [vmem:[%s1291_s5 + $0xe0] sm:$0xff]  ;;  %v667_v58 = vld [vmem:[%s1291_s5 + $0xe8] sm:$0x7f] }
 0x210   : > { %v836_v63 = vpack.c.bf16 %v518_v60, %v508_v59  ;;  %v525_v0 = vpop.permute.xlu0 %524  ;;  %v527_v1 = vpop.permute.xlu1 %526  ;;  %v834_v2 = vpack.c.bf16 %v519_v62, %v509_v61  ;;  %v878_v56 = vpack.c.bf16 %v665_v55, %v664_v54  ;;  %v881_v59 = vpack.c.bf16 %v667_v58, %v666_v57 }
 0x211   : > { %v529_v3 = vsel %vm341_vm8, %v525_v0, %v527_v1 }
 0x212   : > { %835 = vmatprep.subr.bf16.mxu1 %v834_v2  ;;  %849 = vmatpush1.bf16.msra.mxu0 %v848_v7 }
 0x213   : > { %837 = vmatpush1.bf16.msra.mxu1 %v836_v63  ;;  %850 = vmatprep.subr.bf16.mxu0 %v998_v11 }
 0x214   : > { %v523_v4 = vpop.permute.xlu0 %522  ;;  %559 = vmatprep.subr.mxu1 %v529_v3 }
 0x215   : > { %v528_v5 = vsel %vm341_vm8, %v523_v4, %v525_v0 }
 0x216   : > { %852 = vmatpush1.bf16.msra.mxu0 %v851_v29 }
 0x217   : > { %560 = vmatpush1.msra.mxu1 %v528_v5  ;;  %853 = vmatprep.subr.bf16.mxu0 %v998_v11 }
 0x218   : > { %809 = vmatmul.mubr.msk.f32.vlgmr.msra.gmra.mrb[2].mxu1 %vm539_vm10, %v532_v6 }
 0x21a   : > { %855 = vmatpush1.bf16.msra.mxu0 %v854_v32 }
 0x21b   : > { %856 = vmatprep.subr.bf16.mxu0 %v998_v11 }
 0x21e   : > { %858 = vmatpush1.bf16.msra.mxu0 %v857_v35 }
 0x21f   : > { %859 = vmatprep.subr.bf16.mxu0 %v998_v11 }
 0x221   : > { %v537_v15 = vpop.permute.xlu1 %536 }
 0x222   : > { %861 = vmatpush1.bf16.msra.mxu0 %v860_v38 }
 0x223   : > { %862 = vmatprep.subr.bf16.mxu0 %v998_v11 }
 0x226   : > { %864 = vmatpush1.bf16.msra.mxu0 %v863_v41 }
 0x227   : > { %865 = vmatprep.subr.bf16.mxu0 %v998_v11 }
 0x22a   : > { %867 = vmatpush1.bf16.msra.mxu0 %v866_v44 }
 0x22b   : > { %868 = vmatprep.subr.bf16.mxu0 %v998_v11 }
 0x22e   : > { %870 = vmatpush1.bf16.msra.mxu0 %v869_v47 }
 0x22f   : > { %871 = vmatprep.subr.bf16.mxu0 %v998_v11 }
 0x232   : > { %873 = vmatpush1.bf16.msra.mxu0 %v872_v50 }
 0x233   : > { %874 = vmatprep.subr.bf16.mxu0 %v998_v11 }
 0x236   : > { %876 = vmatpush1.bf16.msra.mxu0 %v875_v53 }
 0x237   : > { %877 = vmatprep.subr.bf16.mxu0 %v998_v11 }
 0x23a   : > { %879 = vmatpush1.bf16.msra.mxu0 %v878_v56 }
 0x23b   : > { %880 = vmatprep.subr.bf16.mxu0 %v998_v11 }
 0x23e   : > { %883 = vmatpush1.bf16.msk.msra.mxu0 %vm882_vm13, %v881_v59 }
 0x2eb   : > { %v609_v16 = vpop.f32.mrb[2].mxu1 }
 0x2ec   : > { %v1173_v19 = vadd.f32 %v609_v16, %v537_v15  ;;  %v611_v20 = vpop.f32.mrb[3].mxu1 }
 0x2ed   : > { %v1175_v21 = vadd.f32 %v611_v20, %v537_v15 }
 0x2ee   : > { %v614_v22 = vmax.f32 %v1173_v19, 0.0 }
 0x2ef   : > { %v615_v24 = vmax.f32 %v1175_v21, 0.0 }
 0x2f0   : > { %618 = vrot.lane.b32.xlu0 %v614_v22, %s990_s29 }
 0x2f1   : > { %620 = vrot.lane.b32.xlu1 %v615_v24, %s990_s29 }
 0x362   : > { %v619_v60 = vpop.permute.xlu0 %618 }
 0x363   : > { %v621_v61 = vpop.permute.xlu1 %620 }
 0x364   : > { %v622_v62 = vsel %vm264_vm0, %v619_v60, %v621_v61  ;;  %v626_v63 = vmax.f32 %v615_v24, %v621_v61 }
 0x365   : > { %v625_v0 = vmax.f32 %v614_v22, %v622_v62 }
 0x366   : > { %631 = vrot.lane.b32.xlu1 %v626_v63, %s989_s28 }
 0x367   : > { %629 = vrot.lane.b32.xlu0 %v625_v0, %s989_s28 }
 0x3d8   : > { %v632_v1 = vpop.permute.xlu1 %631 }
 0x3d9   : > { %v637_v2 = vmax.f32 %v626_v63, %v632_v1  ;;  %v630_v3 = vpop.permute.xlu0 %629 }
 0x3da   : > { %v633_v4 = vsel %vm286_vm2, %v630_v3, %v632_v1 }
 0x3db   : > { %v636_v5 = vmax.f32 %v625_v0, %v633_v4  ;;  %811 = vmatprep.mubr.msk.f32.mxu0 %vm297_vm4, %v637_v2 }
 0x3dd   : > { %740 = vmatmul.mubr.f32.vlgmr.msra.gmra.mrb[0].mxu0 %v636_v5 }
 0x4b0   : > { %v741_v6 = vpop.f32.mrb[0].mxu0 }
 0x4b1   : > { %745 = vst [vmem:[%s249_s20] sm:$0xff] %v741_v6  ;;  %v743_v8 = vpop.f32.mrb[1].mxu0 }
 0x4b2 PF: > { %s16_s21 = sadd.s32 1, %s986_s21  }
 0x4b3   : > { %p13_p4 = scmp.ge.s32.totalorder %s16_s21, 4  }
 0x4b5   :  { %15 = sbr.rel (!%p13_p4) target bundleno = 1 (0x1), region = 74 }

</bundles_post_ra>
